<compile_context>
chip_gen: v7x
topology: tpu7x:2x2x1
jax: 0.10.0
libtpu: 0.0.40
codegen_flags: <defaults>
</compile_context>

<pallas_src>
import jax
import jax.numpy as jnp
from jax.experimental import pallas as pl
from jax.experimental.pallas import tpu as pltpu


NUM_ACTION_TYPES = 5
NUM_RAISE_CLASSES = 100
NUM_DISCARD_CLASSES = 3

_MAX_BATCH_TILE = 4096  # VMEM guardrail (v7x: 64 MiB physical, 32 MiB default scoped)


def _round_up(x, m):
    return (x + m - 1) // m * m


# --------------------------------------------------------------------------- kernel
def _policy_kernel(x_ref, w1_ref, w23_ref, b_ref, out_ref):
    """fc1 -> relu -> fc2 -> relu -> fused heads, all resident in VMEM.

    x_ref   : [TB, Din]   activations tile (streamed per grid step)
    w1_ref  : [Din, P]    fc1 weight (resident, f32 or bf16)
    w23_ref : [2, P, P]   [fc2 weight, fused+padded head weight] (resident)
    b_ref   : [3, P]      [fc1 bias, fc2 bias, fused+padded head bias] (resident, f32)
    out_ref : [TB, P]     lane-dense fused logits (padding lanes are exactly 0)
    """
    wdt = w1_ref.dtype                  # MXU input dtype (bf16 by default, or f32)
    b = b_ref[...]                      # [3, P] f32

    # fc1 + relu (accumulate + elementwise in f32)
    h = jnp.dot(x_ref[...].astype(wdt), w1_ref[...],
                preferred_element_type=jnp.float32) + b[0:1, :]
    h = jnp.maximum(h, 0.0)

    # fc2 + relu
    h = jnp.dot(h.astype(wdt), w23_ref[0],
                preferred_element_type=jnp.float32) + b[1:2, :]
    h = jnp.maximum(h, 0.0)

    # fused heads: single 128-lane-wide matmul + unmasked lane-dense store
    out_ref[...] = (jnp.dot(h.astype(wdt), w23_ref[1],
                            preferred_element_type=jnp.float32)
                    + b[2:3, :]).astype(out_ref.dtype)


# --------------------------------------------------------------------------- packing
def pack_params(params, weight_dtype=jnp.bfloat16):
    """Pack the 5 Linear layers into 3 kernel operands (do this ONCE, not per call).

    Head packing order is [raise | action_type | discard] so the 100-wide raise head
    starts at lane 0 (aligned slice in the wrapper).

    Returns (w1_p [Din, P], w23 [2, P, P], b_all [3, P] f32, head_sizes=(nr, na, nd)).
    Padding is all-zero so padded lanes/columns contribute nothing.
    """
    (w1, b1) = params["fc1"]
    (w2, b2) = params["fc2"]
    (wa, ba) = params["action_type_head"]
    (wr, br) = params["raise_head"]
    (wd, bd) = params["discard_head"]

    input_dim, hidden = w1.shape
    n_head_out = wr.shape[1] + wa.shape[1] + wd.shape[1]
    P = max(_round_up(hidden, 128), _round_up(n_head_out, 128))

    def pad2(a, rows, cols):
        return jnp.pad(a, ((0, rows - a.shape[0]), (0, cols - a.shape[1])))

    w1_p = pad2(w1, input_dim, P).astype(weight_dtype)             # [Din, P]
    w2_p = pad2(w2, P, P)
    wh_p = pad2(jnp.concatenate([wr, wa, wd], axis=1), P, P)       # fused heads
    w23 = jnp.stack([w2_p, wh_p], axis=0).astype(weight_dtype)     # [2, P, P]

    b_all = jnp.concatenate(
        [pad2(b1, 1, P), pad2(b2, 1, P),
         pad2(jnp.concatenate([br, ba, bd], axis=1), 1, P)],
        axis=0).astype(jnp.float32)                                # [3, P]

    head_sizes = (wr.shape[1], wa.shape[1], wd.shape[1])           # (raise, action, discard)
    return w1_p, w23, b_all, head_sizes


# --------------------------------------------------------------------------- helpers
def _pick_batch_tile(batch_tile, B):
    """Tile size: big (amortize step overhead), capped, multiple of 8 when < B."""
    TB = min(batch_tile, B, _MAX_BATCH_TILE)
    if TB < B:
        TB = max(8, (TB // 8) * 8)      # (8,128) rule applies when block != full dim
    return TB


def _batch_dim_semantics(num_steps):
    """True 2-TensorCore sharding on v7x; plain 'parallel' elsewhere / on failure."""
    try:
        kind = jax.devices()[0].device_kind.lower()
        if ("v7" in kind) and num_steps >= 2:
            return (pltpu.CORE_PARALLEL,)
    except Exception:
        pass
    return ("parallel",)


# --------------------------------------------------------------------------- forward
def policy_network_forward(x, packed, *, batch_tile=2048, out_dtype=jnp.bfloat16):
    """x: [B, input_dim] f32; packed: output of pack_params.

    Returns (action_type_logits [B,5], raise_logits [B,100], discard_logits [B,3]).
    Set out_dtype=jnp.float32 (and pack with weight_dtype=jnp.float32) for exact
    parity with the f32 PyTorch module.
    """
    w1_p, w23, b_all, head_sizes = packed
    B, input_dim = x.shape
    din = w1_p.shape[0]
    P = w23.shape[-1]
    assert input_dim == din, "x feature dim must match packed fc1 weight"

    TB = _pick_batch_tile(batch_tile, B)
    num_steps = pl.cdiv(B, TB)

    fused = pl.pallas_call(
        _policy_kernel,
        out_shape=jax.ShapeDtypeStruct((B, P), out_dtype),
        grid_spec=pltpu.PrefetchScalarGridSpec(
            num_scalar_prefetch=0,
            grid=(num_steps,),
            in_specs=[
                pl.BlockSpec((TB, din), lambda i: (i, 0)),        # x tile (streamed)
                pl.BlockSpec((din, P), lambda i: (0, 0)),         # fc1 W (resident)
                pl.BlockSpec((2, P, P), lambda i: (0, 0, 0)),     # fc2 + heads W (resident)
                pl.BlockSpec((3, P), lambda i: (0, 0)),           # biases (resident)
            ],
            out_specs=pl.BlockSpec((TB, P), lambda i: (i, 0)),    # lane-dense fused logits
        ),
        compiler_params=pltpu.CompilerParams(
            dimension_semantics=_batch_dim_semantics(num_steps)),
    )(x, w1_p, w23, b_all)

    # Slice the real logits off the 128-padded slab. Raise head sits at lane 0 so the
    # widest slice is an aligned view; padding lanes are exact zeros but must NOT be
    # exposed as extra classes to downstream softmax/argmax.
    nr, na, nd = head_sizes
    raise_logits = fused[:, :nr]
    action_type_logits = fused[:, nr:nr + na]
    discard_logits = fused[:, nr + na:nr + na + nd]
    return action_type_logits, raise_logits, discard_logits


# --------------------------------------------------------------------------- init / ref
def init_params(key, input_dim, hidden_dim=128, num_action_types=NUM_ACTION_TYPES,
                num_raise_classes=NUM_RAISE_CLASSES, num_discard_classes=NUM_DISCARD_CLASSES):
    """nn.Linear-style U(-1/sqrt(fan_in), 1/sqrt(fan_in)); weights stored [in, out]."""
    def linear(k, fan_in, fan_out):
        kw, kb = jax.random.split(k)
        bound = 1.0 / jnp.sqrt(jnp.float32(fan_in))
        w = jax.random.uniform(kw, (fan_in, fan_out), jnp.float32, -bound, bound)
        b = jax.random.uniform(kb, (1, fan_out), jnp.float32, -bound, bound)
        return w, b

    keys = jax.random.split(key, 5)
    return {
        "fc1": linear(keys[0], input_dim, hidden_dim),
        "fc2": linear(keys[1], hidden_dim, hidden_dim),
        "action_type_head": linear(keys[2], hidden_dim, num_action_types),
        "raise_head": linear(keys[3], hidden_dim, num_raise_classes),
        "discard_head": linear(keys[4], hidden_dim, num_discard_classes),
    }


def _reference_forward(x, params):
    (w1, b1) = params["fc1"]
    (w2, b2) = params["fc2"]
    h = jnp.maximum(x @ w1 + b1, 0.0)
    h = jnp.maximum(h @ w2 + b2, 0.0)
    (wa, ba) = params["action_type_head"]
    (wr, br) = params["raise_head"]
    (wd, bd) = params["discard_head"]
    return h @ wa + ba, h @ wr + br, h @ wd + bd


# --------------------------------------------------------------------------- demo
if __name__ == "__main__":
    key = jax.random.PRNGKey(0)
    k_params, k_x = jax.random.split(key)

    B, input_dim, hidden_dim = 8, 32, 128
    params = init_params(k_params, input_dim, hidden_dim)
    x = jax.random.normal(k_x, (B, input_dim), jnp.float32)

    ra, rr, rd = _reference_forward(x, params)

    # 1) Exact-parity path: f32 weights, f32 output — matches the PyTorch module.
    packed_f32 = jax.block_until_ready(pack_params(params, weight_dtype=jnp.float32))
    a32, r32, d32 = policy_network_forward(x, packed_f32, out_dtype=jnp.float32)
    jax.block_until_ready((a32, r32, d32))
    assert a32.shape == (B, NUM_ACTION_TYPES)
    assert r32.shape == (B, NUM_RAISE_CLASSES)
    assert d32.shape == (B, NUM_DISCARD_CLASSES)
    assert jnp.allclose(a32, ra, atol=1e-5, rtol=1e-5)
    assert jnp.allclose(r32, rr, atol=1e-5, rtol=1e-5)
    assert jnp.allclose(d32, rd, atol=1e-5, rtol=1e-5)

    # 2) Fast path (default): bf16 MXU inputs + bf16 output slab; f32 accumulation.
    #    Looser tolerance is the expected precision change, not a bug.
    packed_bf16 = jax.block_until_ready(pack_params(params))            # bf16 weights
    a16, r16, d16 = policy_network_forward(x, packed_bf16)              # bf16 logits
    jax.block_until_ready((a16, r16, d16))
    assert jnp.allclose(a16.astype(jnp.float32), ra, atol=5e-2, rtol=5e-2)
    assert jnp.allclose(r16.astype(jnp.float32), rr, atol=5e-2, rtol=5e-2)
    assert jnp.allclose(d16.astype(jnp.float32), rd, atol=5e-2, rtol=5e-2)

    print("KERNEL_OK")
</pallas_src>

<mosaic_0001>
module attributes {stable_mosaic.version = 11 : i64} {
  func.func @_policy_kernel(%arg0: i32, %arg1: memref<8x32xf32, #tpu.memory_space<vmem>>, %arg2: memref<32x128xf32, #tpu.memory_space<vmem>>, %arg3: memref<2x128x128xf32, #tpu.memory_space<vmem>>, %arg4: memref<3x128xf32, #tpu.memory_space<vmem>>, %arg5: memref<8x128xf32, #tpu.memory_space<vmem>>) attributes {dimension_semantics = [#tpu.dimension_semantics<parallel>], iteration_bounds = array<i64: 1>, scalar_prefetch = 0 : i64, scratch_operands = 0 : i64, tpu.core_type = #tpu.core_type<tc>, window_params = [{transform_indices = @transform_0, window_bounds = array<i64: 8, 32>}, {pipeline_mode = #tpu.pipeline_mode<synchronous>, transform_indices = @transform_1, window_bounds = array<i64: 32, 128>}, {pipeline_mode = #tpu.pipeline_mode<synchronous>, transform_indices = @transform_2, window_bounds = array<i64: 2, 128, 128>}, {pipeline_mode = #tpu.pipeline_mode<synchronous>, transform_indices = @transform_3, window_bounds = array<i64: 3, 128>}, {transform_indices = @transform_4, window_bounds = array<i64: 8, 128>}]} {
    %c0 = arith.constant 0 : index
    %c0_0 = arith.constant 0 : index
    %0 = vector.load %arg4[%c0, %c0_0] : memref<3x128xf32, #tpu.memory_space<vmem>>, vector<3x128xf32>
    %c0_1 = arith.constant 0 : index
    %c0_2 = arith.constant 0 : index
    %1 = vector.load %arg1[%c0_1, %c0_2] : memref<8x32xf32, #tpu.memory_space<vmem>>, vector<8x32xf32>
    %c0_3 = arith.constant 0 : index
    %c0_4 = arith.constant 0 : index
    %2 = vector.load %arg2[%c0_3, %c0_4] : memref<32x128xf32, #tpu.memory_space<vmem>>, vector<32x128xf32>
    %cst = arith.constant dense<0.000000e+00> : vector<8x128xf32>
    %3 = tpu.matmul %1, %2, %cst {dimension_numbers = #tpu.dot_dimension_numbers<[1], [0], [0], [1], [0, 0, 1, 1], [], []>} : vector<8x32xf32>, vector<32x128xf32>, vector<8x128xf32> -> vector<8x128xf32>
    %4 = vector.extract_strided_slice %0 {offsets = [0, 0], sizes = [1, 128], strides = [1, 1]} : vector<3x128xf32> to vector<1x128xf32>
    %5 = vector.broadcast %4 : vector<1x128xf32> to vector<8x128xf32>
    %6 = arith.addf %3, %5 : vector<8x128xf32>
    %cst_5 = arith.constant 0.000000e+00 : f32
    %7 = vector.broadcast %cst_5 : f32 to vector<8x128xf32>
    %8 = arith.maximumf %6, %7 : vector<8x128xf32>
    %c0_6 = arith.constant 0 : index
    %c0_7 = arith.constant 0 : index
    %c0_8 = arith.constant 0 : index
    %9 = vector.load %arg3[%c0_6, %c0_7, %c0_8] : memref<2x128x128xf32, #tpu.memory_space<vmem>>, vector<1x128x128xf32>
    %10 = vector.shape_cast %9 : vector<1x128x128xf32> to vector<128x128xf32>
    %cst_9 = arith.constant dense<0.000000e+00> : vector<8x128xf32>
    %11 = tpu.matmul %8, %10, %cst_9 {dimension_numbers = #tpu.dot_dimension_numbers<[1], [0], [0], [1], [0, 0, 1, 1], [], []>} : vector<8x128xf32>, vector<128x128xf32>, vector<8x128xf32> -> vector<8x128xf32>
    %12 = vector.extract_strided_slice %0 {offsets = [1, 0], sizes = [1, 128], strides = [1, 1]} : vector<3x128xf32> to vector<1x128xf32>
    %13 = vector.broadcast %12 : vector<1x128xf32> to vector<8x128xf32>
    %14 = arith.addf %11, %13 : vector<8x128xf32>
    %cst_10 = arith.constant 0.000000e+00 : f32
    %15 = vector.broadcast %cst_10 : f32 to vector<8x128xf32>
    %16 = arith.maximumf %14, %15 : vector<8x128xf32>
    %c1 = arith.constant 1 : index
    %c0_11 = arith.constant 0 : index
    %c0_12 = arith.constant 0 : index
    %17 = vector.load %arg3[%c1, %c0_11, %c0_12] : memref<2x128x128xf32, #tpu.memory_space<vmem>>, vector<1x128x128xf32>
    %18 = vector.shape_cast %17 : vector<1x128x128xf32> to vector<128x128xf32>
    %cst_13 = arith.constant dense<0.000000e+00> : vector<8x128xf32>
    %19 = tpu.matmul %16, %18, %cst_13 {dimension_numbers = #tpu.dot_dimension_numbers<[1], [0], [0], [1], [0, 0, 1, 1], [], []>} : vector<8x128xf32>, vector<128x128xf32>, vector<8x128xf32> -> vector<8x128xf32>
    %20 = vector.extract_strided_slice %0 {offsets = [2, 0], sizes = [1, 128], strides = [1, 1]} : vector<3x128xf32> to vector<1x128xf32>
    %21 = vector.broadcast %20 : vector<1x128xf32> to vector<8x128xf32>
    %22 = arith.addf %19, %21 : vector<8x128xf32>
    %c0_14 = arith.constant 0 : index
    %c0_15 = arith.constant 0 : index
    %23 = vector.load %arg5[%c0_14, %c0_15] : memref<8x128xf32, #tpu.memory_space<vmem>>, vector<8x128xf32>
    tpu.vector_store %arg5[%c0_14, %c0_15], %22 {strides = array<i32>} : memref<8x128xf32, #tpu.memory_space<vmem>>, vector<8x128xf32>,
    return
  }
  func.func @transform_0(%arg0: i32) -> (i32, i32) {
    %c0_i32 = arith.constant 0 : i32
    %c0_i32_0 = arith.constant 0 : i32
    return %arg0, %c0_i32 : i32, i32
  }
  func.func @transform_1(%arg0: i32) -> (i32, i32) {
    %c0_i32 = arith.constant 0 : i32
    %c0_i32_0 = arith.constant 0 : i32
    %c0_i32_1 = arith.constant 0 : i32
    return %c0_i32, %c0_i32_0 : i32, i32
  }
  func.func @transform_2(%arg0: i32) -> (i32, i32, i32) {
    %c0_i32 = arith.constant 0 : i32
    %c0_i32_0 = arith.constant 0 : i32
    %c0_i32_1 = arith.constant 0 : i32
    %c0_i32_2 = arith.constant 0 : i32
    return %c0_i32, %c0_i32_0, %c0_i32_1 : i32, i32, i32
  }
  func.func @transform_3(%arg0: i32) -> (i32, i32) {
    %c0_i32 = arith.constant 0 : i32
    %c0_i32_0 = arith.constant 0 : i32
    %c0_i32_1 = arith.constant 0 : i32
    return %c0_i32, %c0_i32_0 : i32, i32
  }
  func.func @transform_4(%arg0: i32) -> (i32, i32) {
    %c0_i32 = arith.constant 0 : i32
    %c0_i32_0 = arith.constant 0 : i32
    return %arg0, %c0_i32 : i32, i32
  }
}

</mosaic_0001>

<bundles_post_ra>
// kernel: tpu_custom_call.1
= control target key start
LH: loop header
LB: loop body
LE: loop exit
PB: predicated region body
PF: predicated region fallthrough
CT: control target
= control target key end

     0   :  { %9 = vsyncpa [#allocation3], 0  ;;  %s731_s0 = inlined_call_operand.hbm [shape: f32[8,32], index: 0, kind: input, shape index: {}]   ;;  %s732_s1 = inlined_call_operand.hbm [shape: f32[32,128], index: 1, kind: input, shape index: {}]   ;;  %s733_s2 = inlined_call_operand.hbm [shape: f32[2,128,128], index: 2, kind: input, shape index: {}]   ;;  %s734_s3 = inlined_call_operand.vmem [shape: f32[3,128], index: 3, kind: input, shape index: {}]   ;;  %s735_s4 = inlined_call_operand.hbm [shape: f32[8,128], index: 4, kind: output, shape index: {}]  }
   0x1   :  { %10 = vsyncpa [#allocation6], 0 }
   0x2   :  { %11 = vsyncpa [#allocation4], 0  ;;  %s619_s15 = smov [#allocation5]   ;;  %s525_s19 = scalar_lea.hbm %s732_s1, 512 }
   0x3   :  { %s27_s16 = sshll.u32 %s619_s15, 4  ;;  %p526_p0 = scmp.ne.s32.totalorder %s732_s1, %s525_s19  ;;  %s28_s16 = int_to_ptr.vmem [resolvable:$true] %s27_s16 }
   0x4   :  { %p529_p1 = scmp.lt.u32.totalorder %s525_s19, %s732_s1 }
   0x6   :  { %p531_p2 = pnand %p529_p1, %p526_p0 }
   0x8   :  { %534 = shalt.err (!%p531_p2)
}
   0x9   :  { %s535_s24 = scalar_lea.vmem %s28_s16, 512  ;;  %p540_p4 = scmp.lt.s32.totalorder %s28_s16, %s28_s16 }
   0xa   :  { %p536_p3 = scmp.ne.s32.totalorder %s28_s16, %s535_s24  ;;  %p541_p5 = scmp.lt.s32.totalorder %s535_s24, %s535_s24 }
   0xc   :  { %p542_p6 = por %p541_p5, %p540_p4 }
   0xe   :  { %p543_p7 = pnand %p542_p6, %p536_p3 }
  0x10   :  { %546 = shalt.err (!%p543_p7)
}
  0x11   :  { %s620_s25 = smov 128   ;;  %s621_s26 = smov 8  }
  0x12   :  { %33 = dma.hbm_to_vmem [thread:$0]  %s732_s1, 512, %s28_s16, [#allocation6], %s620_s25, %s620_s25, %s621_s26  }
  0x13   :  { %s622_s29 = smov [#allocation2]   ;;  %s623_s5 = smov [#allocation7]  }
  0x14   :  { %s18_s30 = sshll.u32 %s622_s29, 4  ;;  %s39_s6 = sshll.u32 %s623_s5, 4  ;;  %s19_s30 = int_to_ptr.vmem [resolvable:$true] %s18_s30  ;;  %s40_s6 = int_to_ptr.vmem [resolvable:$true] %s39_s6 }
  0x15   :  { %s547_s9 = scalar_lea.hbm %s731_s0, 128 }
  0x16   :  { %p548_p8 = scmp.ne.s32.totalorder %s731_s0, %s547_s9  ;;  %p551_p9 = scmp.lt.u32.totalorder %s547_s9, %s731_s0 }
  0x18   :  { %p553_p10 = pnand %p551_p9, %p548_p8 }
  0x1a   :  { %556 = shalt.err (!%p553_p10)
}
  0x1b   :  { %s557_s1 = scalar_lea.vmem %s19_s30, 128  ;;  %p562_p12 = scmp.lt.s32.totalorder %s19_s30, %s19_s30 }
  0x1c   :  { %p558_p11 = scmp.ne.s32.totalorder %s19_s30, %s557_s1  ;;  %p563_p13 = scmp.lt.s32.totalorder %s557_s1, %s557_s1 }
  0x1e   :  { %p564_p0 = por %p563_p13, %p562_p12 }
  0x20   :  { %p565_p1 = pnand %p564_p0, %p558_p11 }
  0x22   :  { %568 = shalt.err (!%p565_p1)
}
  0x23   :  { %21 = dma.hbm_to_vmem [thread:$0]  %s731_s0, 128, %s19_s30, [#allocation3]  }
  0x24   :  { %s569_s18 = scalar_lea.hbm %s733_s2, 4096 }
  0x25   :  { %p570_p2 = scmp.ne.s32.totalorder %s733_s2, %s569_s18  ;;  %p573_p3 = scmp.lt.u32.totalorder %s569_s18, %s733_s2 }
  0x27   :  { %p575_p4 = pnand %p573_p3, %p570_p2 }
  0x29   :  { %578 = shalt.err (!%p575_p4)
}
  0x2a   :  { %s579_s23 = scalar_lea.vmem %s40_s6, 4096  ;;  %p584_p6 = scmp.lt.s32.totalorder %s40_s6, %s40_s6 }
  0x2b   :  { %p580_p5 = scmp.ne.s32.totalorder %s40_s6, %s579_s23  ;;  %p585_p7 = scmp.lt.s32.totalorder %s579_s23, %s579_s23 }
  0x2d   :  { %p586_p8 = por %p585_p7, %p584_p6 }
  0x2f   :  { %p587_p9 = pnand %p586_p8, %p580_p5 }
  0x31   :  { %590 = shalt.err (!%p587_p9)
}
  0x32   :  { %45 = dma.hbm_to_vmem [thread:$0]  %s733_s2, 4096, %s40_s6, [#allocation6], %s620_s25, %s620_s25, %s621_s26  }
  0x33   :  { %613 = dma.done.wait [#allocation3], 128  }
  0x34   :  { %614 = vsyncadd [#allocation3], 4294967168 }
  0x35   :  { %615 = dma.done.wait [#allocation6], 4608  }
  0x36   :  { %616 = vsyncadd [#allocation6], 4294962688  ;;  %v624_v0 = vmov 0.0|0.0   ;;  %vm625_vm0 = vmmov 0   ;;  %v626_v1 = vmov 0.0   ;;  %v59_v2 = vld [vmem:[#allocation5] sm:$0xff]  ;;  %v63_v54 = vlaneseq }
  0x37   :  { %462 = vmatprep.subr.bf16.mxu0 %v624_v0  ;;  %389 = vmatprep.mubr.msk.f32.mxu0 %vm625_vm0, %v626_v1  ;;  %v60_v3 = vld [vmem:[#allocation5 + $0x8] sm:$0xff]  ;;  %v61_v4 = vld [vmem:[#allocation5 + $0x10] sm:$0xff]  ;;  %v62_v6 = vld [vmem:[#allocation5 + $0x18] sm:$0xff]  ;;  %vm67_vm1 = vcmask 261120  }
  0x38   :  { %468 = vmatprep.subr.bf16.mxu1 %v624_v0  ;;  %424 = vmatprep.mubr.msk.f32.mxu1 %vm625_vm0, %v626_v1  ;;  %v463_v5 = vpack.c.bf16 %v60_v3, %v59_v2  ;;  %v142_v7 = vld [vmem:[#allocation7] sm:$0xff]  ;;  %v143_v8 = vld [vmem:[#allocation7 + $0x8] sm:$0xff]  ;;  %v144_v9 = vld [vmem:[#allocation7 + $0x10] sm:$0xff]  ;;  %v466_v11 = vpack.c.bf16 %v62_v6, %v61_v4  ;;  %v64_v55 = vshrl.u32 %v63_v54, 7 }
  0x39   :  { %v145_v10 = vld [vmem:[#allocation7 + $0x18] sm:$0xff]  ;;  %v469_v12 = vpack.c.bf16 %v143_v8, %v142_v7  ;;  %v146_v14 = vld [vmem:[#allocation7 + $0x20] sm:$0xff]  ;;  %v147_v15 = vld [vmem:[#allocation7 + $0x28] sm:$0xff] }
  0x3a   :  { %464 = vmatpush3.bf16.msra.mxu0 %v463_v5  ;;  %v472_v13 = vpack.c.bf16 %v145_v10, %v144_v9  ;;  %v58_v16 = vld [vmem:[#allocation2] sm:$0xff]  ;;  %v475_v17 = vpack.c.bf16 %v147_v15, %v146_v14  ;;  %v148_v18 = vld [vmem:[#allocation7 + $0x30] sm:$0xff]  ;;  %v150_v21 = vld [vmem:[#allocation7 + $0x40] sm:$0xff]  ;;  %v65_v56 = vsub.s32 0, %v64_v55  ;;  %v160_v3 = vsub.s32 1, %v64_v55 }
  0x3b   :  { %465 = vmatprep.subr.bf16.mxu0 %v624_v0  ;;  %470 = vmatpush3.bf16.msra.mxu1 %v469_v12  ;;  %v149_v19 = vld [vmem:[#allocation7 + $0x38] sm:$0xff]  ;;  %v151_v22 = vld [vmem:[#allocation7 + $0x48] sm:$0xff]  ;;  %v152_v24 = vld [vmem:[#allocation7 + $0x50] sm:$0xff]  ;;  %v252_v8 = vsub.s32 2, %v64_v55 }
  0x3c   :  { %471 = vmatprep.subr.bf16.mxu1 %v624_v0  ;;  %v478_v20 = vpack.c.bf16 %v149_v19, %v148_v18  ;;  %v481_v23 = vpack.c.bf16 %v151_v22, %v150_v21  ;;  %v153_v25 = vld [vmem:[#allocation7 + $0x58] sm:$0xff]  ;;  %v154_v27 = vld [vmem:[#allocation7 + $0x60] sm:$0xff]  ;;  %v155_v28 = vld [vmem:[#allocation7 + $0x68] sm:$0xff] }
  0x3d   :  { %v484_v26 = vpack.c.bf16 %v153_v25, %v152_v24  ;;  %v487_v29 = vpack.c.bf16 %v155_v28, %v154_v27  ;;  %v156_v30 = vld [vmem:[#allocation7 + $0x70] sm:$0xff]  ;;  %v157_v31 = vld [vmem:[#allocation7 + $0x78] sm:$0xff]  ;;  %v234_v33 = vld [vmem:[#allocation7 + $0x80] sm:$0xff] }
  0x3e   :  { %467 = vmatpush3.bf16.msra.mxu0 %v466_v11  ;;  %v490_v32 = vpack.c.bf16 %v157_v31, %v156_v30  ;;  %v235_v34 = vld [vmem:[#allocation7 + $0x88] sm:$0xff]  ;;  %v236_v35 = vld [vmem:[#allocation7 + $0x90] sm:$0xff]  ;;  %v237_v37 = vld [vmem:[#allocation7 + $0x98] sm:$0xff] }
  0x3f   :  { %492 = vmatprep.subr.bf16.mxu0 %v624_v0  ;;  %473 = vmatpush3.bf16.msra.mxu1 %v472_v13  ;;  %v493_v36 = vpack.c.bf16 %v235_v34, %v234_v33  ;;  %v496_v38 = vpack.c.bf16 %v237_v37, %v236_v35  ;;  %v238_v39 = vld [vmem:[#allocation7 + $0xa0] sm:$0xff]  ;;  %v239_v40 = vld [vmem:[#allocation7 + $0xa8] sm:$0xff]  ;;  %v240_v42 = vld [vmem:[#allocation7 + $0xb0] sm:$0xff] }
  0x40   :  { %474 = vmatprep.subr.bf16.mxu1 %v624_v0  ;;  %v499_v41 = vpack.c.bf16 %v239_v40, %v238_v39  ;;  %v241_v43 = vld [vmem:[#allocation7 + $0xb8] sm:$0xff]  ;;  %v242_v45 = vld [vmem:[#allocation7 + $0xc0] sm:$0xff]  ;;  %v243_v46 = vld [vmem:[#allocation7 + $0xc8] sm:$0xff] }
  0x41   :  { %390 = vmatmul.mubr.msk.f32.vlgmr.msra.gmra.mrb[0].mxu0 %vm67_vm1, %v58_v16  ;;  %v502_v44 = vpack.c.bf16 %v241_v43, %v240_v42  ;;  %v505_v47 = vpack.c.bf16 %v243_v46, %v242_v45  ;;  %v244_v48 = vld [vmem:[#allocation7 + $0xd0] sm:$0xff]  ;;  %v245_v49 = vld [vmem:[#allocation7 + $0xd8] sm:$0xff]  ;;  %v246_v51 = vld [vmem:[#allocation7 + $0xe0] sm:$0xff] }
  0x42   :  { %459 = vmatprep.mubr.msk.f32.mxu0 %vm625_vm0, %v626_v1  ;;  %494 = vmatpush3.bf16.msra.mxu0 %v493_v36  ;;  %v508_v50 = vpack.c.bf16 %v245_v49, %v244_v48  ;;  %v247_v52 = vld [vmem:[#allocation7 + $0xe8] sm:$0xff]  ;;  %v57_v57 = vld [vmem:[%s734_s3] sm:$0x7]  ;;  %v248_v63 = vld [vmem:[#allocation7 + $0xf0] sm:$0xff]  ;;  %s627_s3 = smov [#allocation8]  }
  0x43   :  { %476 = vmatpush3.bf16.msra.mxu1 %v475_v17  ;;  %495 = vmatprep.subr.bf16.mxu0 %v624_v0  ;;  %v511_v53 = vpack.c.bf16 %v247_v52, %v246_v51  ;;  %v66_v58 = vrot.slane %v57_v57, %v65_v56  ;;  %v249_v1 = vld [vmem:[#allocation7 + $0xf8] sm:$0xff]  ;;  %v161_v4 = vrot.slane %v57_v57, %v160_v3  ;;  %s331_s26 = sshll.u32 %s627_s3, 4  ;;  %s332_s26 = int_to_ptr.vmem [resolvable:$true] %s331_s26 }
  0x44   :  { %477 = vmatprep.subr.bf16.mxu1 %v624_v0  ;;  %v514_v2 = vpack.c.bf16 %v249_v1, %v248_v63  ;;  %v253_v9 = vrot.slane %v57_v57, %v252_v8  ;;  %s591_s27 = scalar_lea.vmem %s332_s26, 128  ;;  %p596_p11 = scmp.lt.s32.totalorder %s332_s26, %s332_s26 }
  0x45   :  { %p592_p10 = scmp.ne.s32.totalorder %s332_s26, %s591_s27  ;;  %p597_p12 = scmp.lt.s32.totalorder %s591_s27, %s591_s27 }
  0x46   :  { %497 = vmatpush3.bf16.msra.mxu0 %v496_v38 }
  0x47   :  { %479 = vmatpush3.bf16.msra.mxu1 %v478_v20  ;;  %498 = vmatprep.subr.bf16.mxu0 %v624_v0  ;;  %p598_p13 = por %p597_p12, %p596_p11 }
  0x48   :  { %480 = vmatprep.subr.bf16.mxu1 %v624_v0 }
  0x49   :  { %p599_p0 = pnand %p598_p13, %p592_p10 }
  0x4a   :  { %500 = vmatpush3.bf16.msra.mxu0 %v499_v41 }
  0x4b   :  { %482 = vmatpush3.bf16.msra.mxu1 %v481_v23  ;;  %501 = vmatprep.subr.bf16.mxu0 %v624_v0 }
  0x4c   :  { %483 = vmatprep.subr.bf16.mxu1 %v624_v0 }
  0x4e   :  { %503 = vmatpush3.bf16.msra.mxu0 %v502_v44 }
  0x4f   :  { %485 = vmatpush3.bf16.msra.mxu1 %v484_v26  ;;  %504 = vmatprep.subr.bf16.mxu0 %v624_v0 }
  0x50   :  { %486 = vmatprep.subr.bf16.mxu1 %v624_v0 }
  0x52   :  { %506 = vmatpush3.bf16.msra.mxu0 %v505_v47 }
  0x53   :  { %488 = vmatpush3.bf16.msra.mxu1 %v487_v29  ;;  %507 = vmatprep.subr.bf16.mxu0 %v624_v0 }
  0x54   :  { %489 = vmatprep.subr.bf16.mxu1 %v624_v0 }
  0x56   :  { %509 = vmatpush3.bf16.msra.mxu0 %v508_v50 }
  0x57   :  { %491 = vmatpush3.bf16.msra.mxu1 %v490_v32  ;;  %510 = vmatprep.subr.bf16.mxu0 %v624_v0 }
  0x5a   :  { %512 = vmatpush3.bf16.msra.mxu0 %v511_v53 }
  0x5b   :  { %513 = vmatprep.subr.bf16.mxu0 %v624_v0 }
  0x5e   :  { %515 = vmatpush3.bf16.msra.mxu0 %v514_v2 }
 0x114   :  { %v137_v59 = vpop.f32.mrb[0].mxu0 }
 0x115   :  { %v138_v60 = vadd.f32 %v137_v59, %v66_v58  ;;  %v391_v61 = vpop.f32.mrb[1].mxu0 }
 0x117   :  { %v141_v62 = vmax.f32 %v138_v60, 0.0 }
 0x119   :  { %425 = vmatmul.mubr.f32.vlgmr.msra.gmra.mrb[0].mxu1 %v141_v62 }
 0x1ec   :  { %v228_v0 = vpop.f32.mrb[0].mxu1 }
 0x1ed   :  { %v229_v5 = vadd.f32 %v228_v0, %v161_v4  ;;  %v426_v6 = vpop.f32.mrb[1].mxu1 }
 0x1ef   :  { %v232_v7 = vmax.f32 %v229_v5, 0.0 }
 0x1f1   :  { %460 = vmatmul.mubr.f32.vlgmr.msra.gmra.mrb[2].mxu0 %v232_v7 }
 0x2c4   :  { %v320_v10 = vpop.f32.mrb[2].mxu0 }
 0x2c5   :  { %v321_v11 = vadd.f32 %v320_v10, %v253_v9  ;;  %v461_v12 = vpop.f32.mrb[3].mxu0 }
 0x2c7   :  { %324 = vst [vmem:[#allocation8] sm:$0xff] %v321_v11 }
 0x2c8   :  { %602 = shalt.err (!%p599_p0)
}
 0x2c9   :  { %s603_s30 = scalar_lea.hbm %s735_s4, 128 }
 0x2ca   :  { %p604_p1 = scmp.ne.s32.totalorder %s735_s4, %s603_s30  ;;  %p607_p2 = scmp.lt.u32.totalorder %s603_s30, %s735_s4 }
 0x2cc   :  { %p609_p3 = pnand %p607_p2, %p604_p1 }
 0x2ce   :  { %612 = shalt.err (!%p609_p3)
}
 0x2cf   :  { %334 = dma.vmem_to_hbm [thread:$0]  %s332_s26, 128, %s735_s4, [#allocation4]  }
 0x2d0   :  { %617 = dma.done.wait [#allocation4], 128  }
 0x2d1   :  { %618 = vsyncadd [#allocation4], 4294967168 }
 0x2d2   :  { %338 = vsyncpa [#allocation3], 1 }
 0x2d3   :  { %339 = vsyncpa [#allocation6], 1 }
 0x2d4   :  { %340 = vsyncpa [#allocation4], 1 }

</bundles_post_ra>
